<compile_context>
chip_gen: v7x
topology: tpu7x:2x2x1
jax: 0.10.0
libtpu: 0.0.40
codegen_flags: <defaults>
</compile_context>

<pallas_src>
import jax
import jax.numpy as jnp
from jax.experimental import pallas as pl
from jax.experimental.pallas import tpu as pltpu


_LANE = 128
_SUBLANE = 8


def _round_up(n, m):
    return ((n + m - 1) // m) * m


# ---------------------------------------------------------------------------
# Fused Pallas kernel:
#   h = tanh(x @ W1 + b1)      (encoder stub: bf16 MXU matmul, f32 epilogue)
#   y = h @ W2 + b2            (confidence head: f32 matmul, f32 epilogue)
# The intermediate h stays entirely in vregs/VMEM.
# ---------------------------------------------------------------------------
def _fused_confidence_kernel(x_ref, w1_ref, b1_ref, w2_ref, b2_ref, o_ref):
    # x: (TB, Din) f32 -> bf16 cast in-kernel (VPU, free under DMA bottleneck)
    x = x_ref[...].astype(jnp.bfloat16)
    h = jnp.dot(x, w1_ref[...], preferred_element_type=jnp.float32)
    h = jnp.tanh(h + b1_ref[...])                      # f32 bias-add + tanh (EUP)
    # Keep h in f32 for the second contraction (MXU has huge slack here).
    y = jnp.dot(h, w2_ref[...], preferred_element_type=jnp.float32)
    o_ref[...] = (y + b2_ref[...]).astype(o_ref.dtype)


def _dense_reference(prepared, dn):
    """Fused linear+tanh+linear in plain jnp, same numeric policy as kernel."""
    h = jnp.tanh(
        jnp.dot(dn.astype(jnp.bfloat16), prepared["enc_w"],
                preferred_element_type=jnp.float32) + prepared["enc_b"])
    return jnp.dot(h, prepared["conf_w"],
                   preferred_element_type=jnp.float32) + prepared["conf_b"]


def fused_dn_confidence(dn, prepared, *, batch_tile=1024, min_kernel_batch=17):
    """dn: (B, Din) f32.  Returns confidence scores (B, num_classes) f32
    (squeezed to (B,) if num_classes == 1)."""
    B, Din = dn.shape
    Dhid = prepared["enc_w"].shape[1]
    Dout = prepared["conf_w"].shape[1]

    if B < min_kernel_batch:
        # Tiny batch: the pallas_call is pure fixed overhead; XLA's fused
        # linear+tanh+linear is strictly faster.
        scores = _dense_reference(prepared, dn)
    else:
        # Batch tile: big enough to amortize ~0.35us/step pipeline overhead,
        # split so the grid has >= 2 steps (v7x 2-TC megacore split).
        TB = min(batch_tile, max(_SUBLANE, _round_up(pl.cdiv(B, 2), _SUBLANE)))
        grid = (pl.cdiv(B, TB),)

        # VMEM budget from the lane-padded tile footprint (x/out double-
        # buffered, weights resident, in-kernel intermediates), capped per-chip.
        din_l = _round_up(Din, _LANE)
        dhid_l = _round_up(Dhid, _LANE)
        dout_l = _round_up(Dout, _LANE)
        bytes_needed = (
            2 * TB * din_l * 4          # x tiles (f32, double-buffered)
            + 2 * TB * dout_l * 4       # out tiles (f32, double-buffered)
            + din_l * dhid_l * 2        # W1 (bf16, resident)
            + dhid_l * dout_l * 4       # W2 (f32, resident)
            + (dhid_l + dout_l) * 4 * _SUBLANE   # biases (padded rows)
            + TB * dhid_l * 4           # intermediate h
            + TB * din_l * 2            # bf16 copy of x
        )
        try:
            cap = pltpu.get_tpu_info().vmem_capacity_bytes // 2  # v7x: 32 MiB
        except Exception:
            cap = 32 * 1024 * 1024
        vmem_limit = int(min(max(2 * bytes_needed, 8 * 1024 * 1024), cap))

        cost = pl.CostEstimate(
            flops=2 * B * (Din * Dhid + Dhid * Dout),
            transcendentals=B * Dhid,
            bytes_accessed=(B * Din * 4 + B * Dout * 4
                            + Din * Dhid * 2 + Dhid * Dout * 4
                            + (Dhid + Dout) * 4),
        )

        out = pl.pallas_call(
            _fused_confidence_kernel,
            out_shape=jax.ShapeDtypeStruct((B, Dout), jnp.float32),
            grid_spec=pl.GridSpec(
                grid=grid,
                in_specs=[
                    pl.BlockSpec((TB, Din), lambda i: (i, 0)),    # x: batch-tiled
                    pl.BlockSpec((Din, Dhid), lambda i: (0, 0)),  # W1: resident
                    pl.BlockSpec((1, Dhid), lambda i: (0, 0)),    # b1: resident
                    pl.BlockSpec((Dhid, Dout), lambda i: (0, 0)), # W2: resident
                    pl.BlockSpec((1, Dout), lambda i: (0, 0)),    # b2: resident
                ],
                out_specs=pl.BlockSpec((TB, Dout), lambda i: (i, 0)),
            ),
            compiler_params=pltpu.CompilerParams(
                dimension_semantics=("parallel",),   # batch tiles across TCs (v7x)
                vmem_limit_bytes=vmem_limit,
            ),
            cost_estimate=cost,
        )(dn, prepared["enc_w"], prepared["enc_b"],
          prepared["conf_w"], prepared["conf_b"])
        scores = out

    if Dout == 1:                       # torch .squeeze(-1) only drops size-1 dims
        scores = scores[..., 0]
    return scores


# ---------------------------------------------------------------------------
# Module-equivalent wrapper
# ---------------------------------------------------------------------------
def unimodal_dn_confidence_forward(params, x=None, seq_lengths=None, img=None,
                                   pairs=None, rr=None, dn=None):
    if dn is None:
        return None
    # text_model stub (linear+tanh) + ConfidencePredictor, fused in one kernel.
    dn_confidences = fused_dn_confidence(dn, params)
    return {"c-unimodal_dn": dn_confidences}


# ---------------------------------------------------------------------------
# One-time parameter preparation (hoisted out of the per-forward path):
# casts W1 to bf16 for the MXU, keeps W2 / biases in f32 for accuracy,
# reshapes biases to (1, D) rows.
# ---------------------------------------------------------------------------
def prepare_params(raw):
    return {
        "enc_w": raw["enc_w"].astype(jnp.bfloat16),
        "enc_b": raw["enc_b"].astype(jnp.float32).reshape(1, -1),
        "conf_w": raw["conf_w"].astype(jnp.float32),
        "conf_b": raw["conf_b"].astype(jnp.float32).reshape(1, -1),
    }


# ---------------------------------------------------------------------------
# Deterministic parameter init (synthetic; shapes follow the module __init__)
# ---------------------------------------------------------------------------
def init_params(key, dn_in_dim, full_feats_dim_dn, num_classes):
    k1, k2, k3, k4 = jax.random.split(key, 4)
    return {
        # text_model stub: dn_in_dim -> full_feats_dim_dn
        "enc_w": jax.random.normal(k1, (dn_in_dim, full_feats_dim_dn),
                                   jnp.float32) * 0.05,
        "enc_b": jax.random.normal(k2, (full_feats_dim_dn,), jnp.float32) * 0.05,
        # ConfidencePredictor.confidence_layer: full_feats_dim_dn -> num_classes
        "conf_w": jax.random.normal(k3, (full_feats_dim_dn, num_classes),
                                    jnp.float32) * 0.05,
        "conf_b": jax.random.normal(k4, (num_classes,), jnp.float32) * 0.05,
    }


def _reference_forward(prepared, dn):
    """Plain-JAX reference mirroring the kernel's dtype policy."""
    y = _dense_reference(prepared, dn)
    if y.shape[-1] == 1:
        y = y[..., 0]
    return y


if __name__ == "__main__":
    # Small shapes consistent with the module:
    # dn input dim=32, full_feats_dim_dn=64, num_classes=4.
    DN_IN, FULL_FEATS, NUM_CLASSES = 32, 64, 4
    B_SMALL = 2      # exercises the tiny-batch jnp fallback
    B_KERNEL = 100   # exercises the Pallas kernel (grid=2, partial last block)

    key = jax.random.PRNGKey(0)
    k_params, k_dn1, k_dn2 = jax.random.split(key, 3)
    params = prepare_params(init_params(k_params, DN_IN, FULL_FEATS, NUM_CLASSES))

    fwd = jax.jit(lambda p, d: unimodal_dn_confidence_forward(p, dn=d))

    # --- Pallas kernel path ---
    dn_big = jax.random.normal(k_dn1, (B_KERNEL, DN_IN), jnp.float32)
    out_big = fwd(params, dn_big)
    conf_big = jax.block_until_ready(out_big["c-unimodal_dn"])
    ref_big = _reference_forward(params, dn_big)
    assert conf_big.shape == (B_KERNEL, NUM_CLASSES), conf_big.shape
    assert jnp.allclose(conf_big, ref_big, atol=2e-3, rtol=2e-3), (
        jnp.max(jnp.abs(conf_big - ref_big)))

    # --- Tiny-batch fallback path (module-faithful small case, batch=2) ---
    dn_small = jax.random.normal(k_dn2, (B_SMALL, DN_IN), jnp.float32)
    out_small = fwd(params, dn_small)
    conf_small = jax.block_until_ready(out_small["c-unimodal_dn"])
    ref_small = _reference_forward(params, dn_small)
    assert conf_small.shape == (B_SMALL, NUM_CLASSES), conf_small.shape
    assert jnp.allclose(conf_small, ref_small, atol=2e-3, rtol=2e-3), (
        jnp.max(jnp.abs(conf_small - ref_small)))

    print("KERNEL_OK")
</pallas_src>

<mosaic_0001>
module attributes {stable_mosaic.version = 11 : i64} {
  func.func @_fused_confidence_kernel(%arg0: i32, %arg1: memref<56x32xf32, #tpu.memory_space<vmem>>, %arg2: memref<32x64xbf16, #tpu.memory_space<vmem>>, %arg3: memref<1x64xf32, #tpu.memory_space<vmem>>, %arg4: memref<64x4xf32, #tpu.memory_space<vmem>>, %arg5: memref<1x4xf32, #tpu.memory_space<vmem>>, %arg6: memref<56x4xf32, #tpu.memory_space<vmem>>) attributes {dimension_semantics = [#tpu.dimension_semantics<parallel>], iteration_bounds = array<i64: 2>, scalar_prefetch = 0 : i64, scratch_operands = 0 : i64, tpu.core_type = #tpu.core_type<tc>, window_params = [{transform_indices = @transform_0, window_bounds = array<i64: 56, 32>}, {pipeline_mode = #tpu.pipeline_mode<synchronous>, transform_indices = @transform_1, window_bounds = array<i64: 32, 64>}, {pipeline_mode = #tpu.pipeline_mode<synchronous>, transform_indices = @transform_2, window_bounds = array<i64: 1, 64>}, {pipeline_mode = #tpu.pipeline_mode<synchronous>, transform_indices = @transform_3, window_bounds = array<i64: 64, 4>}, {pipeline_mode = #tpu.pipeline_mode<synchronous>, transform_indices = @transform_4, window_bounds = array<i64: 1, 4>}, {transform_indices = @transform_5, window_bounds = array<i64: 56, 4>}]} {
    %c0 = arith.constant 0 : index
    %c0_0 = arith.constant 0 : index
    %0 = vector.load %arg1[%c0, %c0_0] : memref<56x32xf32, #tpu.memory_space<vmem>>, vector<56x32xf32>
    %1 = arith.truncf %0 : vector<56x32xf32> to vector<56x32xbf16>
    %c0_1 = arith.constant 0 : index
    %c0_2 = arith.constant 0 : index
    %2 = vector.load %arg2[%c0_1, %c0_2] : memref<32x64xbf16, #tpu.memory_space<vmem>>, vector<32x64xbf16>
    %cst = arith.constant dense<0.000000e+00> : vector<56x64xf32>
    %3 = tpu.matmul %1, %2, %cst {dimension_numbers = #tpu.dot_dimension_numbers<[1], [0], [0], [1], [0, 0, 1, 1], [], []>} : vector<56x32xbf16>, vector<32x64xbf16>, vector<56x64xf32> -> vector<56x64xf32>
    %c0_3 = arith.constant 0 : index
    %c0_4 = arith.constant 0 : index
    %4 = vector.load %arg3[%c0_3, %c0_4] : memref<1x64xf32, #tpu.memory_space<vmem>>, vector<1x64xf32>
    %5 = vector.broadcast %4 : vector<1x64xf32> to vector<56x64xf32>
    %6 = arith.addf %3, %5 : vector<56x64xf32>
    %7 = math.tanh %6 : vector<56x64xf32>
    %c0_5 = arith.constant 0 : index
    %c0_6 = arith.constant 0 : index
    %8 = vector.load %arg4[%c0_5, %c0_6] : memref<64x4xf32, #tpu.memory_space<vmem>>, vector<64x4xf32>
    %cst_7 = arith.constant dense<0.000000e+00> : vector<56x4xf32>
    %9 = tpu.matmul %7, %8, %cst_7 {dimension_numbers = #tpu.dot_dimension_numbers<[1], [0], [0], [1], [0, 0, 1, 1], [], []>} : vector<56x64xf32>, vector<64x4xf32>, vector<56x4xf32> -> vector<56x4xf32>
    %c0_8 = arith.constant 0 : index
    %c0_9 = arith.constant 0 : index
    %10 = vector.load %arg5[%c0_8, %c0_9] : memref<1x4xf32, #tpu.memory_space<vmem>>, vector<1x4xf32>
    %11 = vector.broadcast %10 : vector<1x4xf32> to vector<56x4xf32>
    %12 = arith.addf %9, %11 : vector<56x4xf32>
    %c0_10 = arith.constant 0 : index
    %c0_11 = arith.constant 0 : index
    %13 = vector.load %arg6[%c0_10, %c0_11] : memref<56x4xf32, #tpu.memory_space<vmem>>, vector<56x4xf32>
    tpu.vector_store %arg6[%c0_10, %c0_11], %12 {strides = array<i32>} : memref<56x4xf32, #tpu.memory_space<vmem>>, vector<56x4xf32>,
    return
  }
  func.func @transform_0(%arg0: i32) -> (i32, i32) {
    %c0_i32 = arith.constant 0 : i32
    %c0_i32_0 = arith.constant 0 : i32
    return %arg0, %c0_i32 : i32, i32
  }
  func.func @transform_1(%arg0: i32) -> (i32, i32) {
    %c0_i32 = arith.constant 0 : i32
    %c0_i32_0 = arith.constant 0 : i32
    %c0_i32_1 = arith.constant 0 : i32
    return %c0_i32, %c0_i32_0 : i32, i32
  }
  func.func @transform_2(%arg0: i32) -> (i32, i32) {
    %c0_i32 = arith.constant 0 : i32
    %c0_i32_0 = arith.constant 0 : i32
    %c0_i32_1 = arith.constant 0 : i32
    return %c0_i32, %c0_i32_0 : i32, i32
  }
  func.func @transform_3(%arg0: i32) -> (i32, i32) {
    %c0_i32 = arith.constant 0 : i32
    %c0_i32_0 = arith.constant 0 : i32
    %c0_i32_1 = arith.constant 0 : i32
    return %c0_i32, %c0_i32_0 : i32, i32
  }
  func.func @transform_4(%arg0: i32) -> (i32, i32) {
    %c0_i32 = arith.constant 0 : i32
    %c0_i32_0 = arith.constant 0 : i32
    %c0_i32_1 = arith.constant 0 : i32
    return %c0_i32, %c0_i32_0 : i32, i32
  }
  func.func @transform_5(%arg0: i32) -> (i32, i32) {
    %c0_i32 = arith.constant 0 : i32
    %c0_i32_0 = arith.constant 0 : i32
    return %arg0, %c0_i32 : i32, i32
  }
}

</mosaic_0001>

<bundles_post_ra>
// kernel: _lambda_.1
= control target key start
LH: loop header
LB: loop body
LE: loop exit
PB: predicated region body
PF: predicated region fallthrough
CT: control target
= control target key end

     0   :  { %s1108_s18 = smov 0   ;;  %s1110_s19 = smov 0   ;;  %s1272_s0 = inlined_call_operand.vmem [shape: f32[100,32], index: 0, kind: input, shape index: {}]   ;;  %s1273_s1 = inlined_call_operand.vmem [shape: bf16[32,64], index: 1, kind: input, shape index: {}]   ;;  %s1274_s2 = inlined_call_operand.vmem [shape: f32[1,64], index: 2, kind: input, shape index: {}]   ;;  %s1275_s3 = inlined_call_operand.vmem [shape: f32[64,4], index: 3, kind: input, shape index: {}]   ;;  %s1276_s4 = inlined_call_operand.vmem [shape: f32[1,4], index: 4, kind: input, shape index: {}]   ;;  %s1277_s5 = inlined_call_operand.vmem [shape: f32[100,4], index: 5, kind: output, shape index: {}]  }
   0x1   :  { %s1112_s20 = smov 0  }
   0x2 LB: > { %s1121_s21 = sadd.s32 4294967295, %s1041_s20   ;;  %s1123_s22 = sadd.s32 1, %s1041_s20   ;;  %s1041_s20 = sphi %s1112_s20, %s1284_s20   ;;  %s1037_s19 = sphi %s1110_s19, %s1283_s19   ;;  %s1033_s18 = sphi %s1108_s18, %s1282_s18  }
   0x3   : > { %s129_s23 = ssub.s32 %s1041_s20, %s1123_s22  ;;  %s132_s24 = sadd.s32 1, %s1037_s19 }
   0x4   : > { %p130_p0 = scmp.eq.s32.totalorder %s129_s23, 0  ;;  %p142_p1 = scmp.ne.s32.totalorder %s1037_s19, %s1033_s18 }
   0x5   : > { %p143_p2 = scmp.eq.s32.totalorder %s1121_s21, 1  ;;  %p754_p3 = scmp.ge.s32.totalorder %s1041_s20, 1 }
   0x6   : > { %s1131_s25 = scalar_select %p130_p0, %s1037_s19, %s132_s24  }
   0x7   : > { %p1133_p4 = por %p143_p2, %p142_p1  ;;  %p196_p5 = scmp.lt.s32.totalorder %s1041_s20, 3 }
   0x9   : > { %p197_p6 = pnand %p754_p3, %p196_p5 }
   0xa   : > { %v967_v0 = vld [vmem:[%s1273_s1] sm:$0xff] (!%p197_p6)   ;;  %s1141_s29 = smul.u32 (!%p197_p6), 7, %s1121_s21  ;;  %v968_v1 = vld [vmem:[%s1273_s1 + $0x8] sm:$0xff] (!%p197_p6)   ;;  %v1075_v4 = vmov (!%p197_p6), 0.0|0.0   ;;  %vm281_vm0 = vcmask (!%p197_p6), 261120   ;;  %v367_v17 = vld [vmem:[%s1275_s3 + $0x10] sm:$0xff] (!%p197_p6) }
   0xb   : > { %200 = sbr.rel (%p197_p6) target bundleno = 544 (0x220), region = 40  ;;  %805 = vmatprep.subr.bf16.mxu0 (!%p197_p6), %v967_v0  ;;  %v365_v2 = vld [vmem:[%s1275_s3] sm:$0xff] (!%p197_p6)  ;;  %v366_v3 = vld [vmem:[%s1275_s3 + $0x8] sm:$0xff] (!%p197_p6)  ;;  %866 = vmatprep.subr.bf16.mxu1 (!%p197_p6), %v1075_v4  ;;  %v368_v18 = vld [vmem:[%s1275_s3 + $0x18] sm:$0xff] (!%p197_p6)  ;;  %vm1076_vm1 = vmmov (!%p197_p6), 0   ;;  %v1077_v26 = vmov (!%p197_p6), 0.0  }
   0xc   : > { %p232_p7 = scmp.lt.s32.totalorder (!%p197_p6), %s1141_s29, 12  ;;  %806 = vmatpush3.bf16.msra.mxu0 (!%p197_p6), %v967_v0  ;;  %v855_v5 = vpack.c.bf16 (!%p197_p6), %v366_v3, %v365_v2  ;;  %v858_v19 = vpack.c.bf16 (!%p197_p6), %v368_v18, %v367_v17  ;;  %v369_v20 = vld [vmem:[%s1275_s3 + $0x20] sm:$0xff] (!%p197_p6)  ;;  %v370_v21 = vld [vmem:[%s1275_s3 + $0x28] sm:$0xff] (!%p197_p6)  ;;  %v371_v23 = vld [vmem:[%s1275_s3 + $0x30] sm:$0xff] (!%p197_p6)  ;;  %839 = vmatprep.mubr.msk.f32.mxu1 (!%p197_p6), %vm1076_vm1, %v1077_v26  ;;  %vm380_vm2 = vcmask (!%p197_p6), 523264   ;;  %vm502_vm3 = vcmask (!%p197_p6), 31744  }
   0xd   : > { %807 = vmatprep.subr.bf16.mxu0 (!%p197_p6), %v968_v1  ;;  %v861_v22 = vpack.c.bf16 (!%p197_p6), %v370_v21, %v369_v20  ;;  %v372_v24 = vld [vmem:[%s1275_s3 + $0x38] sm:$0xff] (!%p197_p6)  ;;  %v756_v27 = vld [vmem:[%s1274_s2] ss:$0 sm:$0xff] (!%p197_p6) }
   0xe   : > { %870 = vmatpush3.bf16.msra.mxu1 (!%p197_p6), %v855_v5  ;;  %v864_v25 = vpack.c.bf16 (!%p197_p6), %v372_v24, %v371_v23  ;;  %v763_v50 = vld [vmem:[%s1276_s4] ss:$0 sm:$0xff] (!%p197_p6) }
   0xf   : > { %867 = vmatprep.subr.bf16.mxu1 (!%p197_p6), %v1075_v4 }
  0x10   : > { %808 = vmatpush3.bf16.msra.mxu0 (!%p197_p6), %v968_v1 }
  0x11   : > { %854 = vmatprep.subr.bf16.mxu0 (!%p197_p6), %v1075_v4 }
  0x12   : > { %s233_s11 = scalar_select %p232_p7, %s1141_s29, 12  ;;  %871 = vmatpush3.bf16.msra.mxu1 %v858_v19 }
  0x13   : > { %868 = vmatprep.subr.bf16.mxu1 %v1075_v4  ;;  %s783_s17 = smul.u32 (%p1133_p4), 56, %s1121_s21 }
  0x14   : > { %s755_s12 = sshll.u32 %s233_s11, 3 }
  0x15   : > { %s235_s15 = scalar_lea.vmem %s1272_s0, %s755_s12  ;;  %s224_s12 = sand.u32 1, %s1033_s18  }
  0x16   : > { %v247_v6 = vld [vmem:[%s235_s15] sm:$0xff]  ;;  %v248_v7 = vld [vmem:[%s235_s15 + $0x8] sm:$0xff]  ;;  %v249_v8 = vld [vmem:[%s235_s15 + $0x10] sm:$0xff]  ;;  %872 = vmatpush3.bf16.msra.mxu1 %v861_v22  ;;  %s874_s13 = smul.u32 56, %s224_s12  ;;  %s518_s18 = ssub.s32 (%p1133_p4), 13, %s1141_s29 }
  0x17   : > { %v254_v9 = vpack.c.bf16 %v248_v7, %v247_v6  ;;  %v250_v10 = vld [vmem:[%s235_s15 + $0x18] sm:$0xff]  ;;  %v251_v11 = vld [vmem:[%s235_s15 + $0x20] sm:$0xff]  ;;  %v252_v12 = vld [vmem:[%s235_s15 + $0x28] sm:$0xff]  ;;  %869 = vmatprep.subr.bf16.mxu1 %v1075_v4  ;;  %p519_p8 = scmp.lt.s32.totalorder (%p1133_p4), %s518_s18, 7  ;;  %s1223_s24 = scalar_lea.vmem (%p1133_p4), %s1277_s5, %s783_s17  }
  0x18   : > { %v255_v13 = vpack.c.bf16 %v250_v10, %v249_v8  ;;  %v256_v14 = vpack.c.bf16 %v252_v12, %v251_v11  ;;  %v253_v15 = vld [vmem:[%s235_s15 + $0x30] sm:$0xff]  ;;  %s1200_s16 = scalar_lea.vmem [#allocation2], %s874_s13  }
  0x19   : > { %809 = vmatprep.mubr.msk.bf16.mxu0 %vm281_vm0, %v254_v9  ;;  %v257_v16 = vpack.c.bf16 %v253_v15, %v253_v15 }
  0x1a   : > { %810 = vmatmul.mubr.msk.bf16.vlgmr.msra.gmra.mrb[0].mxu0 %vm281_vm0, %v255_v13  ;;  %873 = vmatpush3.bf16.msra.mxu1 %v864_v25 }
  0x1b   : > { %813 = vmatprep.mubr.msk.bf16.mxu0 %vm281_vm0, %v256_v14  ;;  %856 = vmatpush3.bf16.msra.mxu0 %v855_v5 }
  0x1c   : > { %857 = vmatprep.subr.bf16.mxu0 %v1075_v4 }
  0x1f   : > { %859 = vmatpush3.bf16.msra.mxu0 %v858_v19 }
  0x20   : > { %860 = vmatprep.subr.bf16.mxu0 %v1075_v4 }
  0x22   : > { %814 = vmatmul.mubr.msk.bf16.gmra.mrb[4].mxu0 %vm281_vm0, %v257_v16 }
  0x23   : > { %862 = vmatpush3.bf16.msra.mxu0 %v861_v22  ;;  %833 = vmatprep.mubr.msk.f32.mxu0 %vm1076_vm1, %v1077_v26 }
  0x24   : > { %863 = vmatprep.subr.bf16.mxu0 %v1075_v4 }
  0x27   : > { %865 = vmatpush3.bf16.msra.mxu0 %v864_v25 }
  0xed   : > { %v811_v28 = vpop.f32.mrb[0].mxu0 }
  0xee   : > { %v337_v29 = vadd.f32 %v811_v28, %v756_v27  ;;  %v328_v30 = vpop.f32.mrb[1].mxu0 }
  0xef   : > { %v329_v31 = vadd.f32 %v756_v27, %v328_v30  ;;  %v812_v32 = vpop.f32.mrb[2].mxu0 }
  0xf0   : > { %969 = vtanh.f32 %v337_v29  ;;  %v340_v33 = vadd.f32 %v812_v32, %v756_v27  ;;  %v331_v34 = vpop.f32.mrb[3].mxu0 }
  0xf1   : > { %971 = vtanh.f32 %v329_v31  ;;  %v332_v35 = vadd.f32 %v756_v27, %v331_v34 }
  0xf2   : > { %973 = vtanh.f32 %v340_v33 }
  0xf3   : > { %975 = vtanh.f32 %v332_v35 }
  0xf5   : > { %v815_v36 = vpop.f32.mrb[4].mxu0 }
  0xf6   : > { %v344_v37 = vpop.f32.mrb[5].mxu0  ;;  %v353_v44 = vadd.f32 %v815_v36, %v756_v27 }
  0xf7   : > { %v345_v38 = vadd.f32 %v756_v27, %v344_v37  ;;  %v816_v39 = vpop.f32.mrb[6].mxu0 }
  0xf8   : > { %v347_v40 = vpop.f32.mrb[7].mxu0 }
  0xf9   : > { %977 = vtanh.f32 %v345_v38  ;;  %v348_v41 = vadd.f32 %v756_v27, %v347_v40 }
  0xfa   : > { %v970_v42 = vpop.eup %969 }
  0xfb   : > { %v972_v43 = vpop.eup %971  ;;  %840 = vmatmul.mubr.msk.f32.vlgmr.msra.gmra.mrb[0].mxu1 %vm380_vm2, %v970_v42  ;;  %979 = vtanh.f32 %v348_v41 }
  0xfc   : > { %834 = vmatmul.mubr.msk.f32.vlgmr.msra.gmra.mrb[8].mxu0 %vm380_vm2, %v972_v43  ;;  %842 = vmatprep.mubr.msk.f32.mxu1 %vm1076_vm1, %v1077_v26  ;;  %v974_v45 = vpop.eup %973  ;;  %981 = vtanh.f32 %v353_v44 }
  0xfd   : > { %836 = vmatprep.mubr.msk.f32.mxu0 %vm1076_vm1, %v1077_v26  ;;  %v976_v46 = vpop.eup %975 }
  0xff   : > { %843 = vmatmul.mubr.msk.f32.gmra.mrb[2].mxu1 %vm380_vm2, %v974_v45 }
 0x100   : > { %837 = vmatmul.mubr.msk.f32.gmra.mrb[10].mxu0 %vm380_vm2, %v976_v46  ;;  %845 = vmatprep.mubr.msk.f32.mxu1 %vm1076_vm1, %v1077_v26 }
 0x103   : > { %v978_v47 = vpop.eup %977 }
 0x104   : > { %846 = vmatmul.mubr.msk.f32.gmra.mrb[4].mxu1 %vm380_vm2, %v978_v47 }
 0x105   : > { %848 = vmatprep.mubr.msk.f32.mxu1 %vm1076_vm1, %v1077_v26  ;;  %v980_v48 = vpop.eup %979 }
 0x106   : > { %v982_v49 = vpop.eup %981 }
 0x108   : > { %849 = vmatmul.mubr.msk.f32.gmra.mrb[6].mxu1 %vm380_vm2, %v980_v48 }
 0x109   : > { %851 = vmatprep.mubr.msk.f32.mxu1 %vm1076_vm1, %v1077_v26 }
 0x10c   : > { %852 = vmatmul.mubr.msk.f32.gmra.mrb[8].mxu1 %vm380_vm2, %v982_v49 }
 0x1ce   : > { %v478_v51 = vpop.f32.mrb[0].mxu1 }
 0x1cf   : > { %v479_v52 = vadd.f32 %v763_v50, %v478_v51  ;;  %v468_v53 = vpop.f32.mrb[8].mxu0  ;;  %v841_v54 = vpop.f32.mrb[1].mxu1 }
 0x1d0   : > { %v469_v55 = vadd.f32 %v763_v50, %v468_v53  ;;  %v835_v56 = vpop.f32.mrb[9].mxu0 }
 0x1d1   : > { %505 = vst.msk [vmem:[%s1200_s16 + $0x10] sm:$0xff] %vm502_vm3, %v479_v52 }
 0x1d2   : > { %503 = vst.msk [vmem:[%s1200_s16] sm:$0xff] %vm502_vm3, %v469_v55  ;;  %v483_v57 = vpop.f32.mrb[2].mxu1 }
 0x1d3   : > { %v484_v58 = vadd.f32 %v763_v50, %v483_v57  ;;  %v473_v59 = vpop.f32.mrb[10].mxu0  ;;  %v844_v60 = vpop.f32.mrb[3].mxu1 }
 0x1d4   : > { %v474_v61 = vadd.f32 %v763_v50, %v473_v59  ;;  %v838_v62 = vpop.f32.mrb[11].mxu0 }
 0x1d5   : > { %506 = vst.msk [vmem:[%s1200_s16 + $0x18] sm:$0xff] %vm502_vm3, %v484_v58 }
 0x1d6   : > { %504 = vst.msk [vmem:[%s1200_s16 + $0x8] sm:$0xff] %vm502_vm3, %v474_v61 }
 0x1d7   : > { %v488_v63 = vpop.f32.mrb[4].mxu1 }
 0x1d8   : > { %v489_v0 = vadd.f32 %v763_v50, %v488_v63  ;;  %v847_v1 = vpop.f32.mrb[5].mxu1 }
 0x1da   : > { %507 = vst.msk [vmem:[%s1200_s16 + $0x20] sm:$0xff] %vm502_vm3, %v489_v0 }
 0x1db   : > { %v493_v2 = vpop.f32.mrb[6].mxu1 }
 0x1dc   : > { %v494_v3 = vadd.f32 %v763_v50, %v493_v2  ;;  %v850_v4 = vpop.f32.mrb[7].mxu1  ;;  %516 = sbr.rel (!%p1133_p4) target bundleno = 544 (0x220), region = 44 }
 0x1de   : > { %508 = vst.msk [vmem:[%s1200_s16 + $0x28] sm:$0xff] %vm502_vm3, %v494_v3 }
 0x1df   : > { %v498_v5 = vpop.f32.mrb[8].mxu1 }
 0x1e0   : > { %v499_v6 = vadd.f32 %v763_v50, %v498_v5  ;;  %v853_v7 = vpop.f32.mrb[9].mxu1 }
 0x1e2   : > { %509 = vst.msk [vmem:[%s1200_s16 + $0x30] sm:$0xff] %vm502_vm3, %v499_v6 }
 0x1e3   : > { %s1286_s18 = smov (!%p519_p8, %s518_s18), 7 }
 0x1e4   : > { %s771_s27 = sshll.u32 %s1286_s18, 7 }
 0x1e5   : > { %p774_p9 = scmp.eq.s32.totalorder %s771_s27, 0 }
 0x1e6   : > { %983 = sdivrem.u32 (!%p774_p9), %s1286_s18, 7 }
 0x1e7   : > { %527 = sbr.rel (%p774_p9) target bundleno = 544 (0x220), region = 48 }
 0x1ef   : > { %s1229_s26 = spop.drf %983 }
 0x1f0   : > { %p775_p10 = scmp.le.s32.totalorder %s1229_s26, 0 }
 0x1f1   : > { %s1279_s21 = smov (!%p775_p10), %s1223_s24  ;;  %s1280_s29 = smov (!%p775_p10), %s1200_s16 }
 0x1f2   : > { %707 = sbr.rel (%p775_p10) target bundleno = 515 (0x203), region = 124  ;;  %s1238_s28 = smov (!%p775_p10), 0  }
 0x1f3   : > { %s1240_s30 = smov (!%p775_p10), 0  }
 0x1f9 LB: >> { %v603_v8 = vld [vmem:[%s1049_s29] sm:$0xff]  ;;  %v605_v9 = vld [vmem:[%s1049_s29 + $0x8] sm:$0xff]  ;;  %v607_v10 = vld [vmem:[%s1049_s29 + $0x10] sm:$0xff]  ;;  %s617_s6 = sadd.s32 1, %s1053_s28  ;;  %s597_s30 = sadd.s32 1, %s1057_s30   ;;  %s1057_s30 = sphi %s1240_s30, %s597_s30   ;;  %s1053_s28 = sphi %s1238_s28, %s1281_s28   ;;  %s1049_s29 = sphi %s1280_s29, %s622_s29   ;;  %s1045_s21 = sphi %s1279_s21, %s623_s21  }
 0x1fa   : >> { %604 = vst [vmem:[%s1045_s21] sm:$0xff] %v603_v8  ;;  %606 = vst [vmem:[%s1045_s21 + $0x8] sm:$0xff] %v605_v9  ;;  %v609_v11 = vld [vmem:[%s1049_s29 + $0x18] sm:$0xff]  ;;  %v611_v12 = vld [vmem:[%s1049_s29 + $0x20] sm:$0xff]  ;;  %p618_p11 = scmp.ge.s32.totalorder %s617_s6, %s1229_s26  ;;  %p596_p12 = scmp.ge.s32.totalorder %s597_s30, %s1229_s26 }
 0x1fb   : >> { %608 = vst [vmem:[%s1045_s21 + $0x10] sm:$0xff] %v607_v10  ;;  %v613_v13 = vld [vmem:[%s1049_s29 + $0x28] sm:$0xff]  ;;  %610 = vst [vmem:[%s1045_s21 + $0x18] sm:$0xff] %v609_v11  ;;  %v615_v14 = vld [vmem:[%s1049_s29 + $0x30] sm:$0xff] }
 0x1fc   : >> { %612 = vst [vmem:[%s1045_s21 + $0x20] sm:$0xff] %v611_v12  ;;  %614 = vst [vmem:[%s1045_s21 + $0x28] sm:$0xff] %v613_v13  ;;  %s1288_s6 = smov (%p618_p11, %s617_s6), 0  ;;  %599 = sbr.rel (!%p596_p12) target bundleno = 505 (0x1f9), region = 130 }
 0x1fd   : >> { %616 = vst [vmem:[%s1045_s21 + $0x30] sm:$0xff] %v615_v14  ;;  %s620_s7 = smul.u32 56, %s1288_s6  ;;  %s1281_s28 = smov %s1288_s6 }
 0x1ff   : >> { %s622_s29 = scalar_lea.vmem %s1200_s16, %s620_s7 [#allocation2]   ;;  %s623_s21 = scalar_lea.vmem %s1223_s24, %s620_s7  }
 0x203 PF: > { %985 = sdivrem.u32 %s1286_s18, 7 }
 0x204   : > { %s776_s8 = smul.u32 56, %s1229_s26 }
 0x206   : > { %s628_s9 = scalar_lea.vmem %s1200_s16, %s776_s8 [#allocation2]   ;;  %s630_s10 = scalar_lea.vmem %s1223_s24, %s776_s8  }
 0x20c   : > { %s986_s11 = spop.drf %985 }
 0x20d   : > { %p778_p13 = scmp.le.s32.totalorder %s986_s11, 0 }
 0x20e   : > { %s1059_s12 = smov (!%p778_p13), %s630_s10   ;;  %s1063_s13 = smov (!%p778_p13), %s628_s9  }
 0x20f   : > { %721 = sbr.rel (%p778_p13) target bundleno = 544 (0x220), region = 135  ;;  %s1067_s14 = smov (!%p778_p13), 0  }
 0x210   : > { %s1071_s15 = smov (!%p778_p13), 0  }
 0x216 LB: >> { %v640_v15 = vld [vmem:[%s1065_s13] sm:$0xff]  ;;  %s642_s17 = sadd.s32 1, %s1069_s14  ;;  %s634_s15 = sadd.s32 1, %s1073_s15   ;;  %s1073_s15 = sphi %s1071_s15, %s634_s15   ;;  %s1069_s14 = sphi %s1067_s14, %s1068_s14   ;;  %s1065_s13 = sphi %s1063_s13, %s647_s13   ;;  %s1061_s12 = sphi %s1059_s12, %s648_s12  }
 0x217   : >> { %641 = vst [vmem:[%s1061_s12] sm:$0xff] %v640_v15  ;;  %p643_p0 = scmp.ge.s32.totalorder %s642_s17, %s986_s11  ;;  %p633_p1 = scmp.ge.s32.totalorder %s634_s15, %s986_s11 }
 0x219   : >> { %s1290_s17 = smov (%p643_p0, %s642_s17), 0  ;;  %636 = sbr.rel (!%p633_p1) target bundleno = 534 (0x216), region = 141 }
 0x21a   : >> { %s779_s16 = sshll.u32 %s1290_s17, 3  ;;  %s1068_s14 = smov %s1290_s17  }
 0x21b   : >> { %s647_s13 = scalar_lea.vmem %s628_s9, %s779_s16 [#allocation2]   ;;  %s648_s12 = scalar_lea.vmem %s630_s10, %s779_s16  }
 0x220 PF: > { %p12_p2 = scmp.ge.s32.totalorder %s1123_s22, 4   ;;  %s1282_s18 = smov %s1037_s19 }
 0x221   : > { %s1283_s19 = smov %s1131_s25  ;;  %s1284_s20 = smov %s1123_s22 }
 0x222   :  { %14 = sbr.rel (!%p12_p2) target bundleno = 2 (0x2), region = 152 }

</bundles_post_ra>
